<compile_context>
chip_gen: v7x
topology: tpu7x:2x2x1
jax: 0.10.0
libtpu: 0.0.40
codegen_flags: <defaults>
</compile_context>

<pallas_src>
import math
import jax
import jax.numpy as jnp
from jax.experimental import pallas as pl
from jax.experimental.pallas import tpu as pltpu

D = 100  # in_features == out_features == 100 (hard-coded in Temporal_FC)


def make_quaternion_mul(kernel):
    """JAX port of make_quaternion_mul (parameter construction glue)."""
    r, i, j, k = jnp.split(kernel, 4, axis=1)
    r2 = jnp.concatenate([r, -i, -j, -k], axis=0)
    i2 = jnp.concatenate([i, r, -k, j], axis=0)
    j2 = jnp.concatenate([j, k, r, -i], axis=0)
    k2 = jnp.concatenate([k, -j, i, r], axis=0)
    hamilton = jnp.concatenate([r2, i2, j2, k2], axis=1)
    assert hamilton.shape == (kernel.shape[1], kernel.shape[1])
    return hamilton


def _mlpblock_kernel(x_ref, h_ref, o_ref):
    # x_ref: (TM, 100) f32 tile; h_ref: (100, 100) f32, resident across grid.
    x = x_ref[...]
    support = jnp.dot(x, h_ref[...], preferred_element_type=jnp.float32)  # MXU
    o_ref[...] = x + jnp.maximum(support, 0.0)                            # VPU + residual


def _round_up(a, b):
    return ((a + b - 1) // b) * b


def mlpblock_forward(x, hamilton, *, tm_target=2048, min_grid=4):
    """y = x + relu(x @ hamilton) with x: (N, 100), hamilton: (100, 100)."""
    n, d = x.shape
    assert hamilton.shape == (d, d)
    x = x.astype(jnp.float32)          # GAMLP does .float() on the input
    hamilton = hamilton.astype(jnp.float32)

    # Row tile: big enough to amortize the per-grid-step overhead, small enough
    # that the grid has >= min_grid steps (v7x: both TCs get work, pipelining
    # kicks in), always a multiple of 8 (f32 sublanes).  No padding of x: the
    # partial last block is masked on store by Pallas.
    tm = min(tm_target, _round_up(pl.cdiv(max(n, 1), min_grid), 8))
    grid = pl.cdiv(n, tm)

    return pl.pallas_call(
        _mlpblock_kernel,
        out_shape=jax.ShapeDtypeStruct((n, d), jnp.float32),
        grid_spec=pl.GridSpec(
            grid=(grid,),
            in_specs=[
                pl.BlockSpec((tm, d), lambda i: (i, 0)),   # x row tiles, pipelined
                pl.BlockSpec((d, d), lambda i: (0, 0)),    # H resident in VMEM
            ],
            out_specs=pl.BlockSpec((tm, d), lambda i: (i, 0)),
        ),
        compiler_params=pltpu.CompilerParams(
            dimension_semantics=("parallel",),
        ),
    )(x, hamilton)


def init_weight(key):
    # MLPblock.reset_parameters: xavier_uniform_(fc0.fc.weight, gain=1e-8)
    fan_in, fan_out = D // 4, D          # weight shape (25, 100)
    gain = 1e-8
    bound = gain * math.sqrt(6.0 / (fan_in + fan_out))
    return jax.random.uniform(
        key, (fan_in, fan_out), dtype=jnp.float32, minval=-bound, maxval=bound
    )


if __name__ == "__main__":
    key = jax.random.PRNGKey(0)
    k_w, k_x, k_w2, k_x2 = jax.random.split(key, 4)

    # --- Module-faithful parameters (gain=1e-8 xavier init) -----------------
    weight = init_weight(k_w)                   # (25, 100)
    hamilton = make_quaternion_mul(weight)      # (100, 100), built once at setup

    N = 1024
    x = jax.random.normal(k_x, (N, D), dtype=jnp.float32)

    y = jax.block_until_ready(mlpblock_forward(x, hamilton))
    y_ref = x + jnp.maximum(x @ hamilton, 0.0)
    assert y.shape == y_ref.shape
    assert jnp.allclose(y, y_ref, atol=1e-5, rtol=1e-5)

    # --- Extra check with O(1) weights and a non-tile-multiple row count ----
    # (the gain=1e-8 init makes relu(x @ H) ~ 0, so exercise the matmul/relu
    # path for real, plus the masked partial last row block at N=777).
    w2 = 0.1 * jax.random.normal(k_w2, (D // 4, D), dtype=jnp.float32)
    h2 = make_quaternion_mul(w2)
    x2 = jax.random.normal(k_x2, (777, D), dtype=jnp.float32)
    y2 = jax.block_until_ready(mlpblock_forward(x2, h2))
    # Reference at HIGHEST precision; loose-ish tolerance so the check is robust
    # to f32-matmul pass-count differences between the MXU and the XLA reference
    # (real bugs here - wrong tile, wrong residual, unmasked rows - are O(1)).
    support_ref = jax.lax.dot_general(
        x2, h2, (((1,), (0,)), ((), ())), precision=jax.lax.Precision.HIGHEST
    )
    y2_ref = x2 + jnp.maximum(support_ref, 0.0)
    assert y2.shape == y2_ref.shape
    assert jnp.allclose(y2, y2_ref, atol=2e-2, rtol=2e-2)

    print("KERNEL_OK")
</pallas_src>

<mosaic_0001>
module attributes {stable_mosaic.version = 11 : i64} {
  func.func @_mlpblock_kernel(%arg0: i32, %arg1: memref<256x100xf32, #tpu.memory_space<vmem>>, %arg2: memref<100x100xf32, #tpu.memory_space<vmem>>, %arg3: memref<256x100xf32, #tpu.memory_space<vmem>>) attributes {dimension_semantics = [#tpu.dimension_semantics<parallel>], iteration_bounds = array<i64: 4>, scalar_prefetch = 0 : i64, scratch_operands = 0 : i64, tpu.core_type = #tpu.core_type<tc>, window_params = [{transform_indices = @transform_0, window_bounds = array<i64: 256, 100>}, {pipeline_mode = #tpu.pipeline_mode<synchronous>, transform_indices = @transform_1, window_bounds = array<i64: 100, 100>}, {transform_indices = @transform_2, window_bounds = array<i64: 256, 100>}]} {
    %c0 = arith.constant 0 : index
    %c0_0 = arith.constant 0 : index
    %0 = vector.load %arg1[%c0, %c0_0] : memref<256x100xf32, #tpu.memory_space<vmem>>, vector<256x100xf32>
    %c0_1 = arith.constant 0 : index
    %c0_2 = arith.constant 0 : index
    %1 = vector.load %arg2[%c0_1, %c0_2] : memref<100x100xf32, #tpu.memory_space<vmem>>, vector<100x100xf32>
    %cst = arith.constant dense<0.000000e+00> : vector<256x100xf32>
    %2 = tpu.matmul %0, %1, %cst {dimension_numbers = #tpu.dot_dimension_numbers<[1], [0], [0], [1], [0, 0, 1, 1], [], []>} : vector<256x100xf32>, vector<100x100xf32>, vector<256x100xf32> -> vector<256x100xf32>
    %cst_3 = arith.constant 0.000000e+00 : f32
    %3 = vector.broadcast %cst_3 : f32 to vector<256x100xf32>
    %4 = arith.maximumf %2, %3 : vector<256x100xf32>
    %5 = arith.addf %0, %4 : vector<256x100xf32>
    %c0_4 = arith.constant 0 : index
    %c0_5 = arith.constant 0 : index
    %6 = vector.load %arg3[%c0_4, %c0_5] : memref<256x100xf32, #tpu.memory_space<vmem>>, vector<256x100xf32>
    tpu.vector_store %arg3[%c0_4, %c0_5], %5 {strides = array<i32>} : memref<256x100xf32, #tpu.memory_space<vmem>>, vector<256x100xf32>,
    return
  }
  func.func @transform_0(%arg0: i32) -> (i32, i32) {
    %c0_i32 = arith.constant 0 : i32
    %c0_i32_0 = arith.constant 0 : i32
    return %arg0, %c0_i32 : i32, i32
  }
  func.func @transform_1(%arg0: i32) -> (i32, i32) {
    %c0_i32 = arith.constant 0 : i32
    %c0_i32_0 = arith.constant 0 : i32
    %c0_i32_1 = arith.constant 0 : i32
    return %c0_i32, %c0_i32_0 : i32, i32
  }
  func.func @transform_2(%arg0: i32) -> (i32, i32) {
    %c0_i32 = arith.constant 0 : i32
    %c0_i32_0 = arith.constant 0 : i32
    return %arg0, %c0_i32 : i32, i32
  }
}

</mosaic_0001>

<bundles_post_ra>
// kernel: tpu_custom_call.1
= control target key start
LH: loop header
LB: loop body
LE: loop exit
PB: predicated region body
PF: predicated region fallthrough
CT: control target
= control target key end

     0   :  { %s902_s9 = smov 0   ;;  %s1225_s0 = inlined_call_operand.vmem [shape: f32[1024,100], index: 0, kind: input, shape index: {}]   ;;  %s1226_s1 = inlined_call_operand.vmem [shape: f32[100,100], index: 1, kind: input, shape index: {}]   ;;  %s1227_s2 = inlined_call_operand.vmem [shape: f32[1024,100], index: 2, kind: output, shape index: {}]  }
   0x1 LB: > { %s670_s10 = sadd.s32 4294967295, %s885_s9   ;;  %p674_p0 = scmp.ge.s32.totalorder %s885_s9, 1  ;;  %s885_s9 = sphi %s902_s9, %s12_s9  }
   0x2   : > { %p113_p1 = scmp.lt.s32.totalorder %s885_s9, 5 }
   0x4   : > { %p114_p2 = pnand %p674_p0, %p113_p1 }
   0x5   : > { %v179_v0 = vld [vmem:[%s1226_s1] sm:$0xff] (!%p114_p2)  ;;  %v180_v1 = vld [vmem:[%s1226_s1 + $0x8] sm:$0xff] (!%p114_p2)  ;;  %v181_v2 = vld [vmem:[%s1226_s1 + $0x10] sm:$0xff] (!%p114_p2)  ;;  %s675_s17 = sshll.u32 (!%p114_p2), %s670_s10, 5  ;;  %vm192_vm0 = vcmask (!%p114_p2), 818176   ;;  %vm289_vm1 = vcmask (!%p114_p2), 1043456  }
   0x6   : > { %117 = sbr.rel (%p114_p2) target bundleno = 281 (0x119), region = 28  ;;  %v833_v3 = vpack.c.bf16 (!%p114_p2), %v180_v1, %v179_v0  ;;  %v182_v4 = vld [vmem:[%s1226_s1 + $0x18] sm:$0xff] (!%p114_p2)  ;;  %p136_p3 = scmp.lt.s32.totalorder (!%p114_p2), %s675_s17, 127  ;;  %v183_v6 = vld [vmem:[%s1226_s1 + $0x20] sm:$0xff] (!%p114_p2)  ;;  %v184_v7 = vld [vmem:[%s1226_s1 + $0x28] sm:$0xff] (!%p114_p2) }
   0x7   : > { %v837_v5 = vpack.c.bf16 (!%p114_p2), %v182_v4, %v181_v2  ;;  %v841_v8 = vpack.c.bf16 (!%p114_p2), %v184_v7, %v183_v6  ;;  %v185_v9 = vld [vmem:[%s1226_s1 + $0x30] sm:$0xff] (!%p114_p2)  ;;  %v186_v10 = vld [vmem:[%s1226_s1 + $0x38] sm:$0xff] (!%p114_p2)  ;;  %v187_v14 = vld [vmem:[%s1226_s1 + $0x40] sm:$0xff] (!%p114_p2) }
   0x8   : > { %834 = vmatprep.subr.bf16.mxu0 (!%p114_p2), %v833_v3  ;;  %857 = vmatprep.subr.bf16.mxu1 (!%p114_p2), %v833_v3  ;;  %v845_v13 = vpack.c.bf16 (!%p114_p2), %v186_v10, %v185_v9  ;;  %v188_v15 = vld [vmem:[%s1226_s1 + $0x48] sm:$0xff] (!%p114_p2)  ;;  %v189_v17 = vld [vmem:[%s1226_s1 + $0x50] sm:$0xff] (!%p114_p2)  ;;  %v190_v18 = vld [vmem:[%s1226_s1 + $0x58] sm:$0xff] (!%p114_p2) }
   0x9   : > { %836 = vmatpush3.bf16.msra.mxu0 (!%p114_p2), %v833_v3  ;;  %864 = vmatpush3.bf16.msra.mxu1 (!%p114_p2), %v833_v3  ;;  %v849_v16 = vpack.c.bf16 (!%p114_p2), %v188_v15, %v187_v14  ;;  %v853_v19 = vpack.c.bf16 (!%p114_p2), %v190_v18, %v189_v17  ;;  %v191_v20 = vld [vmem:[%s1226_s1 + $0x60] sm:$0xf] (!%p114_p2) }
   0xa   : > { %838 = vmatprep.subr.bf16.mxu0 (!%p114_p2), %v837_v5  ;;  %858 = vmatprep.subr.bf16.mxu1 (!%p114_p2), %v837_v5 }
   0xd   : > { %s1229_s17 = smov (!%p136_p3, %s675_s17), 127  ;;  %840 = vmatpush3.bf16.msra.mxu0 %v837_v5  ;;  %865 = vmatpush3.bf16.msra.mxu1 %v837_v5 }
   0xe   : > { %s676_s24 = sshll.u32 %s1229_s17, 3  ;;  %842 = vmatprep.subr.bf16.mxu0 %v841_v8  ;;  %859 = vmatprep.subr.bf16.mxu1 %v841_v8 }
   0xf   : > { %s942_s3 = scalar_lea.vmem %s1225_s0, %s676_s24  ;;  %s1124_s18 = scalar_lea.vmem %s1227_s2, %s676_s24 }
  0x10   : > { %v945_v11 = vld [vmem:[%s942_s3] sm:$0xff]  ;;  %v970_v21 = vld [vmem:[%s942_s3 + $0x8] sm:$0xff]  ;;  %v976_v23 = vld [vmem:[%s942_s3 + $0x10] sm:$0xff] }
  0x11   : > { %v948_v12 = vld [vmem:[%s942_s3 + $0x80] sm:$0xff]  ;;  %785 = vmatprep.mubr.msk.f32.mxu0 %vm192_vm0, %v945_v11  ;;  %844 = vmatpush3.bf16.msra.mxu0 %v841_v8  ;;  %v973_v22 = vld [vmem:[%s942_s3 + $0x88] sm:$0xff]  ;;  %v979_v24 = vld [vmem:[%s942_s3 + $0x90] sm:$0xff] }
  0x12   : > { %809 = vmatprep.mubr.msk.f32.mxu1 %vm192_vm0, %v948_v12  ;;  %866 = vmatpush3.bf16.msra.mxu1 %v841_v8  ;;  %v990_v25 = vld [vmem:[%s942_s3 + $0x18] sm:$0xff]  ;;  %v996_v27 = vld [vmem:[%s942_s3 + $0x20] sm:$0xff]  ;;  %v1010_v29 = vld [vmem:[%s942_s3 + $0x28] sm:$0xff] }
  0x13   : > { %846 = vmatprep.subr.bf16.mxu0 %v845_v13  ;;  %860 = vmatprep.subr.bf16.mxu1 %v845_v13  ;;  %v993_v26 = vld [vmem:[%s942_s3 + $0x98] sm:$0xff]  ;;  %v999_v28 = vld [vmem:[%s942_s3 + $0xa0] sm:$0xff]  ;;  %v1013_v30 = vld [vmem:[%s942_s3 + $0xa8] sm:$0xff] }
  0x14   : > { %v1016_v31 = vld [vmem:[%s942_s3 + $0x30] sm:$0xff]  ;;  %v1030_v33 = vld [vmem:[%s942_s3 + $0x38] sm:$0xff]  ;;  %v1036_v35 = vld [vmem:[%s942_s3 + $0x40] sm:$0xff] }
  0x15   : > { %848 = vmatpush3.bf16.msra.mxu0 %v845_v13  ;;  %v1019_v32 = vld [vmem:[%s942_s3 + $0xb0] sm:$0xff]  ;;  %v1033_v34 = vld [vmem:[%s942_s3 + $0xb8] sm:$0xff]  ;;  %v1039_v36 = vld [vmem:[%s942_s3 + $0xc0] sm:$0xff] }
  0x16   : > { %867 = vmatpush3.bf16.msra.mxu1 %v845_v13  ;;  %850 = vmatprep.subr.bf16.mxu0 %v849_v16  ;;  %v1050_v37 = vld [vmem:[%s942_s3 + $0x48] sm:$0xff]  ;;  %v1056_v39 = vld [vmem:[%s942_s3 + $0x50] sm:$0xff]  ;;  %v1070_v41 = vld [vmem:[%s942_s3 + $0x58] sm:$0xff] }
  0x17   : > { %861 = vmatprep.subr.bf16.mxu1 %v849_v16  ;;  %v1053_v38 = vld [vmem:[%s942_s3 + $0xc8] sm:$0xff]  ;;  %v1059_v40 = vld [vmem:[%s942_s3 + $0xd0] sm:$0xff]  ;;  %v1073_v42 = vld [vmem:[%s942_s3 + $0xd8] sm:$0xff] }
  0x18   : > { %v1076_v43 = vld [vmem:[%s942_s3 + $0x60] sm:$0xff]  ;;  %v1090_v45 = vld [vmem:[%s942_s3 + $0x68] sm:$0xff]  ;;  %v1096_v47 = vld [vmem:[%s942_s3 + $0x70] sm:$0xff] }
  0x19   : > { %852 = vmatpush3.bf16.msra.mxu0 %v849_v16  ;;  %v1079_v44 = vld [vmem:[%s942_s3 + $0xe0] sm:$0xff]  ;;  %v1093_v46 = vld [vmem:[%s942_s3 + $0xe8] sm:$0xff]  ;;  %v1099_v48 = vld [vmem:[%s942_s3 + $0xf0] sm:$0xff] }
  0x1a   : > { %868 = vmatpush3.bf16.msra.mxu1 %v849_v16  ;;  %854 = vmatprep.subr.bf16.mxu0 %v853_v19  ;;  %v1110_v49 = vld [vmem:[%s942_s3 + $0x78] sm:$0xff] }
  0x1b   : > { %862 = vmatprep.subr.bf16.mxu1 %v853_v19  ;;  %v1113_v50 = vld [vmem:[%s942_s3 + $0xf8] sm:$0xff] }
  0x1d   : > { %856 = vmatpush3.bf16.msra.mxu0 %v853_v19 }
  0x1e   : > { %869 = vmatpush3.bf16.msra.mxu1 %v853_v19  ;;  %783 = vmatprep.subr.msk.mxu0 %vm289_vm1, %v191_v20 }
  0x1f   : > { %863 = vmatprep.subr.msk.mxu1 %vm289_vm1, %v191_v20 }
  0x21   : > { %784 = vmatpush3.msk.msra.mxu0 %vm289_vm1, %v191_v20 }
  0x22   : > { %870 = vmatpush3.msk.msra.mxu1 %vm289_vm1, %v191_v20  ;;  %786 = vmatmul.mubr.msk.f32.vlgmr.msra.gmra.mrb[0].mxu0 %vm192_vm0, %v970_v21 }
  0x23   : > { %810 = vmatmul.mubr.msk.f32.vlgmr.msra.gmra.mrb[0].mxu1 %vm192_vm0, %v973_v22  ;;  %788 = vmatprep.mubr.msk.f32.mxu0 %vm192_vm0, %v976_v23 }
  0x24   : > { %812 = vmatprep.mubr.msk.f32.mxu1 %vm192_vm0, %v979_v24 }
  0x26   : > { %789 = vmatmul.mubr.msk.f32.gmra.mrb[2].mxu0 %vm192_vm0, %v990_v25 }
  0x27   : > { %813 = vmatmul.mubr.msk.f32.gmra.mrb[2].mxu1 %vm192_vm0, %v993_v26  ;;  %791 = vmatprep.mubr.msk.f32.mxu0 %vm192_vm0, %v996_v27 }
  0x28   : > { %815 = vmatprep.mubr.msk.f32.mxu1 %vm192_vm0, %v999_v28 }
  0x2a   : > { %792 = vmatmul.mubr.msk.f32.gmra.mrb[4].mxu0 %vm192_vm0, %v1010_v29 }
  0x2b   : > { %816 = vmatmul.mubr.msk.f32.gmra.mrb[4].mxu1 %vm192_vm0, %v1013_v30  ;;  %794 = vmatprep.mubr.msk.f32.mxu0 %vm192_vm0, %v1016_v31 }
  0x2c   : > { %818 = vmatprep.mubr.msk.f32.mxu1 %vm192_vm0, %v1019_v32 }
  0x2e   : > { %795 = vmatmul.mubr.msk.f32.gmra.mrb[6].mxu0 %vm192_vm0, %v1030_v33 }
  0x2f   : > { %819 = vmatmul.mubr.msk.f32.gmra.mrb[6].mxu1 %vm192_vm0, %v1033_v34  ;;  %797 = vmatprep.mubr.msk.f32.mxu0 %vm192_vm0, %v1036_v35 }
  0x30   : > { %821 = vmatprep.mubr.msk.f32.mxu1 %vm192_vm0, %v1039_v36 }
  0x32   : > { %798 = vmatmul.mubr.msk.f32.gmra.mrb[8].mxu0 %vm192_vm0, %v1050_v37 }
  0x33   : > { %822 = vmatmul.mubr.msk.f32.gmra.mrb[8].mxu1 %vm192_vm0, %v1053_v38  ;;  %800 = vmatprep.mubr.msk.f32.mxu0 %vm192_vm0, %v1056_v39 }
  0x34   : > { %824 = vmatprep.mubr.msk.f32.mxu1 %vm192_vm0, %v1059_v40 }
  0x36   : > { %801 = vmatmul.mubr.msk.f32.gmra.mrb[10].mxu0 %vm192_vm0, %v1070_v41 }
  0x37   : > { %825 = vmatmul.mubr.msk.f32.gmra.mrb[10].mxu1 %vm192_vm0, %v1073_v42  ;;  %803 = vmatprep.mubr.msk.f32.mxu0 %vm192_vm0, %v1076_v43 }
  0x38   : > { %827 = vmatprep.mubr.msk.f32.mxu1 %vm192_vm0, %v1079_v44 }
  0x3a   : > { %804 = vmatmul.mubr.msk.f32.gmra.mrb[12].mxu0 %vm192_vm0, %v1090_v45 }
  0x3b   : > { %828 = vmatmul.mubr.msk.f32.gmra.mrb[12].mxu1 %vm192_vm0, %v1093_v46  ;;  %806 = vmatprep.mubr.msk.f32.mxu0 %vm192_vm0, %v1096_v47 }
  0x3c   : > { %830 = vmatprep.mubr.msk.f32.mxu1 %vm192_vm0, %v1099_v48 }
  0x3e   : > { %807 = vmatmul.mubr.msk.f32.gmra.mrb[14].mxu0 %vm192_vm0, %v1110_v49 }
  0x3f   : > { %831 = vmatmul.mubr.msk.f32.gmra.mrb[14].mxu1 %vm192_vm0, %v1113_v50 }
  0xf5   : > { %v787_v51 = vpop.f32.mrb[0].mxu0 }
  0xf6   : > { %v811_v52 = vpop.f32.mrb[0].mxu1  ;;  %v519_v53 = vmax.f32 %v787_v51, 0.0  ;;  %v359_v55 = vpop.f32.mrb[1].mxu0 }
  0xf7   : > { %v535_v54 = vmax.f32 %v811_v52, 0.0  ;;  %v439_v56 = vpop.f32.mrb[1].mxu1  ;;  %v518_v57 = vmax.f32 %v359_v55, 0.0 }
  0xf8   : > { %v534_v58 = vmax.f32 %v439_v56, 0.0  ;;  %v551_v59 = vadd.f32 %v519_v53, %v970_v21 }
  0xf9   : > { %v567_v60 = vadd.f32 %v535_v54, %v973_v22  ;;  %v550_v61 = vadd.f32 %v518_v57, %v945_v11  ;;  %v790_v63 = vpop.f32.mrb[2].mxu0 }
  0xfa   : > { %v566_v62 = vadd.f32 %v534_v58, %v948_v12  ;;  %v814_v0 = vpop.f32.mrb[2].mxu1  ;;  %583 = vst.msk [vmem:[%s1124_s18 + $0x8] sm:$0xff] %vm192_vm0, %v551_v59  ;;  %v521_v1 = vmax.f32 %v790_v63, 0.0  ;;  %v369_v3 = vpop.f32.mrb[3].mxu0 }
  0xfb   : > { %599 = vst.msk [vmem:[%s1124_s18 + $0x88] sm:$0xff] %vm192_vm0, %v567_v60  ;;  %v537_v2 = vmax.f32 %v814_v0, 0.0  ;;  %v449_v4 = vpop.f32.mrb[3].mxu1  ;;  %582 = vst.msk [vmem:[%s1124_s18] sm:$0xff] %vm192_vm0, %v550_v61  ;;  %v520_v5 = vmax.f32 %v369_v3, 0.0 }
  0xfc   : > { %598 = vst.msk [vmem:[%s1124_s18 + $0x80] sm:$0xff] %vm192_vm0, %v566_v62  ;;  %v536_v6 = vmax.f32 %v449_v4, 0.0  ;;  %v553_v7 = vadd.f32 %v521_v1, %v990_v25 }
  0xfd   : > { %v569_v8 = vadd.f32 %v537_v2, %v993_v26  ;;  %v552_v9 = vadd.f32 %v520_v5, %v976_v23  ;;  %v793_v11 = vpop.f32.mrb[4].mxu0 }
  0xfe   : > { %v568_v10 = vadd.f32 %v536_v6, %v979_v24  ;;  %v817_v12 = vpop.f32.mrb[4].mxu1  ;;  %585 = vst.msk [vmem:[%s1124_s18 + $0x18] sm:$0xff] %vm192_vm0, %v553_v7  ;;  %v523_v13 = vmax.f32 %v793_v11, 0.0  ;;  %v379_v15 = vpop.f32.mrb[5].mxu0 }
  0xff   : > { %601 = vst.msk [vmem:[%s1124_s18 + $0x98] sm:$0xff] %vm192_vm0, %v569_v8  ;;  %v539_v14 = vmax.f32 %v817_v12, 0.0  ;;  %v459_v16 = vpop.f32.mrb[5].mxu1  ;;  %584 = vst.msk [vmem:[%s1124_s18 + $0x10] sm:$0xff] %vm192_vm0, %v552_v9  ;;  %v522_v17 = vmax.f32 %v379_v15, 0.0 }
 0x100   : > { %600 = vst.msk [vmem:[%s1124_s18 + $0x90] sm:$0xff] %vm192_vm0, %v568_v10  ;;  %v538_v18 = vmax.f32 %v459_v16, 0.0  ;;  %v555_v19 = vadd.f32 %v523_v13, %v1010_v29 }
 0x101   : > { %v571_v20 = vadd.f32 %v539_v14, %v1013_v30  ;;  %v554_v21 = vadd.f32 %v522_v17, %v996_v27  ;;  %v796_v23 = vpop.f32.mrb[6].mxu0 }
 0x102   : > { %v570_v22 = vadd.f32 %v538_v18, %v999_v28  ;;  %v820_v24 = vpop.f32.mrb[6].mxu1  ;;  %587 = vst.msk [vmem:[%s1124_s18 + $0x28] sm:$0xff] %vm192_vm0, %v555_v19  ;;  %v525_v25 = vmax.f32 %v796_v23, 0.0  ;;  %v389_v51 = vpop.f32.mrb[7].mxu0 }
 0x103   : > { %603 = vst.msk [vmem:[%s1124_s18 + $0xa8] sm:$0xff] %vm192_vm0, %v571_v20  ;;  %v541_v26 = vmax.f32 %v820_v24, 0.0  ;;  %v469_v52 = vpop.f32.mrb[7].mxu1  ;;  %586 = vst.msk [vmem:[%s1124_s18 + $0x20] sm:$0xff] %vm192_vm0, %v554_v21  ;;  %v524_v27 = vmax.f32 %v389_v51, 0.0 }
 0x104   : > { %602 = vst.msk [vmem:[%s1124_s18 + $0xa0] sm:$0xff] %vm192_vm0, %v570_v22  ;;  %v540_v28 = vmax.f32 %v469_v52, 0.0  ;;  %v557_v29 = vadd.f32 %v525_v25, %v1030_v33 }
 0x105   : > { %v573_v30 = vadd.f32 %v541_v26, %v1033_v34  ;;  %v556_v53 = vadd.f32 %v524_v27, %v1016_v31  ;;  %v799_v55 = vpop.f32.mrb[8].mxu0 }
 0x106   : > { %v572_v54 = vadd.f32 %v540_v28, %v1019_v32  ;;  %v823_v56 = vpop.f32.mrb[8].mxu1  ;;  %589 = vst.msk [vmem:[%s1124_s18 + $0x38] sm:$0xff] %vm192_vm0, %v557_v29  ;;  %v527_v57 = vmax.f32 %v799_v55, 0.0  ;;  %v399_v59 = vpop.f32.mrb[9].mxu0 }
 0x107   : > { %605 = vst.msk [vmem:[%s1124_s18 + $0xb8] sm:$0xff] %vm192_vm0, %v573_v30  ;;  %v543_v58 = vmax.f32 %v823_v56, 0.0  ;;  %v479_v60 = vpop.f32.mrb[9].mxu1  ;;  %588 = vst.msk [vmem:[%s1124_s18 + $0x30] sm:$0xff] %vm192_vm0, %v556_v53  ;;  %v526_v31 = vmax.f32 %v399_v59, 0.0 }
 0x108   : > { %604 = vst.msk [vmem:[%s1124_s18 + $0xb0] sm:$0xff] %vm192_vm0, %v572_v54  ;;  %v542_v32 = vmax.f32 %v479_v60, 0.0  ;;  %v559_v33 = vadd.f32 %v527_v57, %v1050_v37 }
 0x109   : > { %v575_v34 = vadd.f32 %v543_v58, %v1053_v38  ;;  %v558_v61 = vadd.f32 %v526_v31, %v1036_v35  ;;  %v802_v63 = vpop.f32.mrb[10].mxu0 }
 0x10a   : > { %v574_v62 = vadd.f32 %v542_v32, %v1039_v36  ;;  %v826_v0 = vpop.f32.mrb[10].mxu1  ;;  %591 = vst.msk [vmem:[%s1124_s18 + $0x48] sm:$0xff] %vm192_vm0, %v559_v33  ;;  %v529_v1 = vmax.f32 %v802_v63, 0.0  ;;  %v409_v3 = vpop.f32.mrb[11].mxu0 }
 0x10b   : > { %607 = vst.msk [vmem:[%s1124_s18 + $0xc8] sm:$0xff] %vm192_vm0, %v575_v34  ;;  %v545_v2 = vmax.f32 %v826_v0, 0.0  ;;  %v489_v4 = vpop.f32.mrb[11].mxu1  ;;  %590 = vst.msk [vmem:[%s1124_s18 + $0x40] sm:$0xff] %vm192_vm0, %v558_v61  ;;  %v528_v35 = vmax.f32 %v409_v3, 0.0 }
 0x10c   : > { %606 = vst.msk [vmem:[%s1124_s18 + $0xc0] sm:$0xff] %vm192_vm0, %v574_v62  ;;  %v544_v36 = vmax.f32 %v489_v4, 0.0  ;;  %v561_v37 = vadd.f32 %v529_v1, %v1070_v41 }
 0x10d   : > { %v577_v38 = vadd.f32 %v545_v2, %v1073_v42  ;;  %v560_v5 = vadd.f32 %v528_v35, %v1056_v39  ;;  %v805_v7 = vpop.f32.mrb[12].mxu0 }
 0x10e   : > { %v576_v6 = vadd.f32 %v544_v36, %v1059_v40  ;;  %v829_v8 = vpop.f32.mrb[12].mxu1  ;;  %593 = vst.msk [vmem:[%s1124_s18 + $0x58] sm:$0xff] %vm192_vm0, %v561_v37  ;;  %v531_v9 = vmax.f32 %v805_v7, 0.0  ;;  %v419_v11 = vpop.f32.mrb[13].mxu0 }
 0x10f   : > { %609 = vst.msk [vmem:[%s1124_s18 + $0xd8] sm:$0xff] %vm192_vm0, %v577_v38  ;;  %v547_v10 = vmax.f32 %v829_v8, 0.0  ;;  %v499_v12 = vpop.f32.mrb[13].mxu1  ;;  %592 = vst.msk [vmem:[%s1124_s18 + $0x50] sm:$0xff] %vm192_vm0, %v560_v5  ;;  %v530_v39 = vmax.f32 %v419_v11, 0.0 }
 0x110   : > { %608 = vst.msk [vmem:[%s1124_s18 + $0xd0] sm:$0xff] %vm192_vm0, %v576_v6  ;;  %v546_v40 = vmax.f32 %v499_v12, 0.0  ;;  %v563_v41 = vadd.f32 %v531_v9, %v1090_v45 }
 0x111   : > { %v579_v42 = vadd.f32 %v547_v10, %v1093_v46  ;;  %v562_v13 = vadd.f32 %v530_v39, %v1076_v43  ;;  %v808_v15 = vpop.f32.mrb[14].mxu0 }
 0x112   : > { %v578_v14 = vadd.f32 %v546_v40, %v1079_v44  ;;  %v832_v16 = vpop.f32.mrb[14].mxu1  ;;  %595 = vst.msk [vmem:[%s1124_s18 + $0x68] sm:$0xff] %vm192_vm0, %v563_v41  ;;  %v533_v17 = vmax.f32 %v808_v15, 0.0  ;;  %v429_v19 = vpop.f32.mrb[15].mxu0 }
 0x113   : > { %611 = vst.msk [vmem:[%s1124_s18 + $0xe8] sm:$0xff] %vm192_vm0, %v579_v42  ;;  %v549_v18 = vmax.f32 %v832_v16, 0.0  ;;  %v509_v45 = vpop.f32.mrb[15].mxu1  ;;  %594 = vst.msk [vmem:[%s1124_s18 + $0x60] sm:$0xff] %vm192_vm0, %v562_v13  ;;  %v532_v43 = vmax.f32 %v429_v19, 0.0 }
 0x114   : > { %610 = vst.msk [vmem:[%s1124_s18 + $0xe0] sm:$0xff] %vm192_vm0, %v578_v14  ;;  %v548_v44 = vmax.f32 %v509_v45, 0.0  ;;  %v565_v46 = vadd.f32 %v533_v17, %v1110_v49 }
 0x115   : > { %v581_v20 = vadd.f32 %v549_v18, %v1113_v50  ;;  %v564_v21 = vadd.f32 %v532_v43, %v1096_v47 }
 0x116   : > { %v580_v22 = vadd.f32 %v548_v44, %v1099_v48  ;;  %597 = vst.msk [vmem:[%s1124_s18 + $0x78] sm:$0xff] %vm192_vm0, %v565_v46 }
 0x117   : > { %613 = vst.msk [vmem:[%s1124_s18 + $0xf8] sm:$0xff] %vm192_vm0, %v581_v20  ;;  %596 = vst.msk [vmem:[%s1124_s18 + $0x70] sm:$0xff] %vm192_vm0, %v564_v21 }
 0x118   : > { %612 = vst.msk [vmem:[%s1124_s18 + $0xf0] sm:$0xff] %vm192_vm0, %v580_v22 }
 0x119 PF: > { %s12_s9 = sadd.s32 1, %s885_s9  }
 0x11a   : > { %p9_p4 = scmp.ge.s32.totalorder %s12_s9, 6  }
 0x11c   :  { %11 = sbr.rel (!%p9_p4) target bundleno = 1 (0x1), region = 58 }

</bundles_post_ra>
